<compile_context>
chip_gen: v5e
topology: v5e:2x2
jax: 0.10.0
libtpu: 0.0.40
codegen_flags: <defaults>
</compile_context>

<pallas_src>
import functools

import jax
import jax.numpy as jnp
from jax.experimental import pallas as pl
from jax.experimental.pallas import tpu as pltpu


def _round_up(x, m):
    return (x + m - 1) // m * m


def _policy_kernel(obs_ref, w1t_ref, b1_ref, w2t_ref, b2_ref, w3t_ref,
                   b3_ref, out_ref, *, max_action):
    """3-layer MLP, batch-on-lanes: intermediates are [features, tile_b]."""
    # [tile_b, S] -> [S, tile_b]: small in-kernel XLU transpose so the wrapper
    # never materializes obs.T as a separate XLA op.
    x = obs_ref[...].T
    # Layer 1: [H, S] @ [S, TB] -> [H, TB]; f32 accumulation on the MXU.
    h1 = jnp.dot(w1t_ref[...], x, preferred_element_type=jnp.float32)
    h1 = jnp.maximum(h1 + b1_ref[...], 0.0)
    # Layer 2: [H, H] @ [H, TB] -> [H, TB]; activations stay f32 (free at K=32).
    h2 = jnp.dot(w2t_ref[...], h1, preferred_element_type=jnp.float32)
    h2 = jnp.maximum(h2 + b2_ref[...], 0.0)
    # Layer 3: [A, H] @ [H, TB] -> [A, TB]; lane-dense tanh epilogue on the EUP.
    h3 = jnp.dot(w3t_ref[...], h2, preferred_element_type=jnp.float32)
    out = jnp.tanh(h3 + b3_ref[...])
    if max_action != 1.0:   # forward() itself uses 1.0; fused scale if requested
        out = out * max_action
    # [A, TB] -> [TB, A]: small transpose so the output is [B, A] directly and
    # no post-kernel transpose dispatch is needed.
    out_ref[...] = out.T.astype(out_ref.dtype)


def prepare_params(params, weight_dtype=jnp.float32):
    """One-time parameter prep (cache & reuse across calls): pre-transposed
    weights and column-shaped biases, so the per-call wrapper issues no extra
    transpose/cast XLA ops around the pallas_call."""
    H = params["w1"].shape[1]
    A = params["w3"].shape[1]
    return {
        "w1t": jnp.asarray(params["w1"].T, dtype=weight_dtype),   # [H, S]
        "w2t": jnp.asarray(params["w2"].T, dtype=weight_dtype),   # [H, H]
        "w3t": jnp.asarray(params["w3"].T, dtype=weight_dtype),   # [A, H]
        "b1": jnp.asarray(params["b1"], jnp.float32).reshape(H, 1),
        "b2": jnp.asarray(params["b2"], jnp.float32).reshape(H, 1),
        "b3": jnp.asarray(params["b3"], jnp.float32).reshape(A, 1),
    }


@functools.partial(jax.jit, static_argnames=("max_action", "tile_b"))
def deterministic_policy_forward(obs, prepared, *, max_action=1.0, tile_b=None):
    """obs: [B, S] float32; prepared: output of prepare_params(). Returns [B, A]."""
    B, S = obs.shape
    H = prepared["w1t"].shape[0]
    A = prepared["w3t"].shape[0]

    # Default: one grid step covering the whole (128-rounded) batch.  For very
    # large batches scale by enlarging tile_b, not by adding grid steps (per-
    # step overhead dominates this kernel); VMEM stays tiny either way.
    if tile_b is None:
        tile_b = _round_up(B, 128)
    tile_b = _round_up(max(128, min(tile_b, _round_up(B, 128))), 128)
    grid = (pl.cdiv(B, tile_b),)
    # If B is not a multiple of tile_b the last block's padded lanes compute on
    # padding data; output stores are masked so results stay correct.

    # VMEM budget guard (inputs/outputs are double-buffered by BlockSpec).
    w_bytes = jnp.dtype(prepared["w1t"].dtype).itemsize
    vmem_bytes = (2 * tile_b * S * 4                           # obs tile
                  + 2 * tile_b * A * 4                         # out tile
                  + 2 * (H * S + H * H + A * H) * w_bytes      # weights
                  + 2 * (2 * H + A) * 4                        # biases
                  + (S + 2 * H + A) * tile_b * 4)              # live f32 temps
    assert vmem_bytes < 24 * 1024 * 1024, (
        f"tile_b={tile_b} needs ~{vmem_bytes / 2**20:.1f} MiB VMEM; shrink tile_b"
        " or raise pltpu.CompilerParams(vmem_limit_bytes=...)")

    # Advisory hint so XLA schedules neighbours around this short kernel.
    flops = 2 * B * (S * H + H * H + H * A)
    bytes_accessed = (B * S * 4 + B * A * 4
                      + (H * S + H * H + A * H) * w_bytes + (2 * H + A) * 4)
    cost = pl.CostEstimate(flops=flops, transcendentals=B * A,
                           bytes_accessed=bytes_accessed)

    return pl.pallas_call(
        functools.partial(_policy_kernel, max_action=float(max_action)),
        out_shape=jax.ShapeDtypeStruct((B, A), jnp.float32),
        grid_spec=pltpu.PrefetchScalarGridSpec(
            num_scalar_prefetch=0,
            grid=grid,
            in_specs=[
                pl.BlockSpec((tile_b, S), lambda i: (i, 0)),   # obs, streamed
                pl.BlockSpec((H, S), lambda i: (0, 0)),        # W1^T, resident
                pl.BlockSpec((H, 1), lambda i: (0, 0)),        # b1
                pl.BlockSpec((H, H), lambda i: (0, 0)),        # W2^T
                pl.BlockSpec((H, 1), lambda i: (0, 0)),        # b2
                pl.BlockSpec((A, H), lambda i: (0, 0)),        # W3^T
                pl.BlockSpec((A, 1), lambda i: (0, 0)),        # b3
            ],
            out_specs=pl.BlockSpec((tile_b, A), lambda i: (i, 0)),
        ),
        compiler_params=pltpu.CompilerParams(
            # grid is 1 by default; "parallel" lets an overridden multi-step
            # grid still shard across v7x TensorCores.
            dimension_semantics=("parallel",)),
        cost_estimate=cost,
    )(obs, prepared["w1t"], prepared["b1"], prepared["w2t"], prepared["b2"],
      prepared["w3t"], prepared["b3"])


def init_params(key, state_dim, hidden_dim, act_dim):
    """PyTorch Linear default init: U(-1/sqrt(fan_in), 1/sqrt(fan_in))."""
    ks = jax.random.split(key, 6)

    def lin(kw, kb, fan_in, fan_out):
        bound = 1.0 / jnp.sqrt(float(fan_in))
        w = jax.random.uniform(kw, (fan_in, fan_out), jnp.float32, -bound, bound)
        b = jax.random.uniform(kb, (fan_out,), jnp.float32, -bound, bound)
        return w, b

    w1, b1 = lin(ks[0], ks[1], state_dim, hidden_dim)
    w2, b2 = lin(ks[2], ks[3], hidden_dim, hidden_dim)
    w3, b3 = lin(ks[4], ks[5], hidden_dim, act_dim)
    return {"w1": w1, "b1": b1, "w2": w2, "b2": b2, "w3": w3, "b3": b3}


def reference_forward(obs, p, *, max_action=1.0,
                      precision=jax.lax.Precision.HIGHEST):
    def mm(x, w):
        return jnp.dot(x, w, precision=precision,
                       preferred_element_type=jnp.float32)
    h1 = jnp.maximum(mm(obs, p["w1"]) + p["b1"], 0.0)
    h2 = jnp.maximum(mm(h1, p["w2"]) + p["b2"], 0.0)
    return jnp.tanh(mm(h2, p["w3"]) + p["b3"]) * max_action


if __name__ == "__main__":
    # DeterministicPolicy(state_dim=16, act_dim=8, max_action=1.0,
    #                     hidden_dim=32, n_hidden=2, dropout=None)
    B, state_dim, hidden_dim, act_dim = 512, 16, 32, 8

    key = jax.random.PRNGKey(0)
    k_obs, k_params = jax.random.split(key)
    obs = jax.random.normal(k_obs, (B, state_dim), dtype=jnp.float32)
    params = init_params(k_params, state_dim, hidden_dim, act_dim)
    prepared = prepare_params(params)            # one-time prep, reused per call

    out = deterministic_policy_forward(obs, prepared)
    out = jax.block_until_ready(out)
    assert out.shape == (B, act_dim)

    # The kernel is all-f32 (no explicit quantization anywhere).  The loose
    # bound only absorbs possible bf16-pass behaviour of the default-precision
    # MXU matmul paths; observed error is typically ~1e-6.
    ref = reference_forward(obs, params)
    err = float(jnp.max(jnp.abs(out - ref)))
    assert err < 2e-2, f"mismatch vs f32 reference: max_abs_err={err}"
    assert bool(jnp.all(jnp.abs(out) <= 1.0)), "tanh output out of range"

    print("KERNEL_OK")
</pallas_src>

<mosaic_0001>
module attributes {stable_mosaic.version = 11 : i64} {
  func.func @_policy_kernel(%arg0: i32, %arg1: memref<512x16xf32, #tpu.memory_space<vmem>>, %arg2: memref<32x16xf32, #tpu.memory_space<vmem>>, %arg3: memref<32x1xf32, #tpu.memory_space<vmem>>, %arg4: memref<32x32xf32, #tpu.memory_space<vmem>>, %arg5: memref<32x1xf32, #tpu.memory_space<vmem>>, %arg6: memref<8x32xf32, #tpu.memory_space<vmem>>, %arg7: memref<8x1xf32, #tpu.memory_space<vmem>>, %arg8: memref<512x8xf32, #tpu.memory_space<vmem>>) attributes {dimension_semantics = [#tpu.dimension_semantics<parallel>], iteration_bounds = array<i64: 1>, scalar_prefetch = 0 : i64, scratch_operands = 0 : i64, tpu.core_type = #tpu.core_type<tc>, window_params = [{transform_indices = @transform_0, window_bounds = array<i64: 512, 16>}, {pipeline_mode = #tpu.pipeline_mode<synchronous>, transform_indices = @transform_1, window_bounds = array<i64: 32, 16>}, {pipeline_mode = #tpu.pipeline_mode<synchronous>, transform_indices = @transform_2, window_bounds = array<i64: 32, 1>}, {pipeline_mode = #tpu.pipeline_mode<synchronous>, transform_indices = @transform_3, window_bounds = array<i64: 32, 32>}, {pipeline_mode = #tpu.pipeline_mode<synchronous>, transform_indices = @transform_4, window_bounds = array<i64: 32, 1>}, {pipeline_mode = #tpu.pipeline_mode<synchronous>, transform_indices = @transform_5, window_bounds = array<i64: 8, 32>}, {pipeline_mode = #tpu.pipeline_mode<synchronous>, transform_indices = @transform_6, window_bounds = array<i64: 8, 1>}, {transform_indices = @transform_7, window_bounds = array<i64: 512, 8>}]} {
    %c0 = arith.constant 0 : index
    %c0_0 = arith.constant 0 : index
    %0 = vector.load %arg1[%c0, %c0_0] : memref<512x16xf32, #tpu.memory_space<vmem>>, vector<512x16xf32>
    %1 = tpu.transpose %0, [1, 0] : vector<512x16xf32> -> vector<16x512xf32>
    %c0_1 = arith.constant 0 : index
    %c0_2 = arith.constant 0 : index
    %2 = vector.load %arg2[%c0_1, %c0_2] : memref<32x16xf32, #tpu.memory_space<vmem>>, vector<32x16xf32>
    %cst = arith.constant dense<0.000000e+00> : vector<32x512xf32>
    %3 = tpu.matmul %2, %1, %cst {dimension_numbers = #tpu.dot_dimension_numbers<[1], [0], [0], [1], [0, 0, 1, 1], [], []>} : vector<32x16xf32>, vector<16x512xf32>, vector<32x512xf32> -> vector<32x512xf32>
    %c0_3 = arith.constant 0 : index
    %c0_4 = arith.constant 0 : index
    %4 = vector.load %arg3[%c0_3, %c0_4] : memref<32x1xf32, #tpu.memory_space<vmem>>, vector<32x1xf32>
    %5 = vector.broadcast %4 : vector<32x1xf32> to vector<32x512xf32>
    %6 = arith.addf %3, %5 : vector<32x512xf32>
    %cst_5 = arith.constant 0.000000e+00 : f32
    %7 = vector.broadcast %cst_5 : f32 to vector<32x512xf32>
    %8 = arith.maximumf %6, %7 : vector<32x512xf32>
    %c0_6 = arith.constant 0 : index
    %c0_7 = arith.constant 0 : index
    %9 = vector.load %arg4[%c0_6, %c0_7] : memref<32x32xf32, #tpu.memory_space<vmem>>, vector<32x32xf32>
    %cst_8 = arith.constant dense<0.000000e+00> : vector<32x512xf32>
    %10 = tpu.matmul %9, %8, %cst_8 {dimension_numbers = #tpu.dot_dimension_numbers<[1], [0], [0], [1], [0, 0, 1, 1], [], []>} : vector<32x32xf32>, vector<32x512xf32>, vector<32x512xf32> -> vector<32x512xf32>
    %c0_9 = arith.constant 0 : index
    %c0_10 = arith.constant 0 : index
    %11 = vector.load %arg5[%c0_9, %c0_10] : memref<32x1xf32, #tpu.memory_space<vmem>>, vector<32x1xf32>
    %12 = vector.broadcast %11 : vector<32x1xf32> to vector<32x512xf32>
    %13 = arith.addf %10, %12 : vector<32x512xf32>
    %cst_11 = arith.constant 0.000000e+00 : f32
    %14 = vector.broadcast %cst_11 : f32 to vector<32x512xf32>
    %15 = arith.maximumf %13, %14 : vector<32x512xf32>
    %c0_12 = arith.constant 0 : index
    %c0_13 = arith.constant 0 : index
    %16 = vector.load %arg6[%c0_12, %c0_13] : memref<8x32xf32, #tpu.memory_space<vmem>>, vector<8x32xf32>
    %cst_14 = arith.constant dense<0.000000e+00> : vector<8x512xf32>
    %17 = tpu.matmul %16, %15, %cst_14 {dimension_numbers = #tpu.dot_dimension_numbers<[1], [0], [0], [1], [0, 0, 1, 1], [], []>} : vector<8x32xf32>, vector<32x512xf32>, vector<8x512xf32> -> vector<8x512xf32>
    %c0_15 = arith.constant 0 : index
    %c0_16 = arith.constant 0 : index
    %18 = vector.load %arg7[%c0_15, %c0_16] : memref<8x1xf32, #tpu.memory_space<vmem>>, vector<8x1xf32>
    %19 = vector.broadcast %18 : vector<8x1xf32> to vector<8x512xf32>
    %20 = arith.addf %17, %19 : vector<8x512xf32>
    %21 = math.tanh %20 : vector<8x512xf32>
    %22 = tpu.transpose %21, [1, 0] : vector<8x512xf32> -> vector<512x8xf32>
    %c0_17 = arith.constant 0 : index
    %c0_18 = arith.constant 0 : index
    %23 = vector.load %arg8[%c0_17, %c0_18] : memref<512x8xf32, #tpu.memory_space<vmem>>, vector<512x8xf32>
    tpu.vector_store %arg8[%c0_17, %c0_18], %22 {strides = array<i32>} : memref<512x8xf32, #tpu.memory_space<vmem>>, vector<512x8xf32>,
    return
  }
  func.func @transform_0(%arg0: i32) -> (i32, i32) {
    %c0_i32 = arith.constant 0 : i32
    %c0_i32_0 = arith.constant 0 : i32
    return %arg0, %c0_i32 : i32, i32
  }
  func.func @transform_1(%arg0: i32) -> (i32, i32) {
    %c0_i32 = arith.constant 0 : i32
    %c0_i32_0 = arith.constant 0 : i32
    %c0_i32_1 = arith.constant 0 : i32
    return %c0_i32, %c0_i32_0 : i32, i32
  }
  func.func @transform_2(%arg0: i32) -> (i32, i32) {
    %c0_i32 = arith.constant 0 : i32
    %c0_i32_0 = arith.constant 0 : i32
    %c0_i32_1 = arith.constant 0 : i32
    return %c0_i32, %c0_i32_0 : i32, i32
  }
  func.func @transform_3(%arg0: i32) -> (i32, i32) {
    %c0_i32 = arith.constant 0 : i32
    %c0_i32_0 = arith.constant 0 : i32
    %c0_i32_1 = arith.constant 0 : i32
    return %c0_i32, %c0_i32_0 : i32, i32
  }
  func.func @transform_4(%arg0: i32) -> (i32, i32) {
    %c0_i32 = arith.constant 0 : i32
    %c0_i32_0 = arith.constant 0 : i32
    %c0_i32_1 = arith.constant 0 : i32
    return %c0_i32, %c0_i32_0 : i32, i32
  }
  func.func @transform_5(%arg0: i32) -> (i32, i32) {
    %c0_i32 = arith.constant 0 : i32
    %c0_i32_0 = arith.constant 0 : i32
    %c0_i32_1 = arith.constant 0 : i32
    return %c0_i32, %c0_i32_0 : i32, i32
  }
  func.func @transform_6(%arg0: i32) -> (i32, i32) {
    %c0_i32 = arith.constant 0 : i32
    %c0_i32_0 = arith.constant 0 : i32
    %c0_i32_1 = arith.constant 0 : i32
    return %c0_i32, %c0_i32_0 : i32, i32
  }
  func.func @transform_7(%arg0: i32) -> (i32, i32) {
    %c0_i32 = arith.constant 0 : i32
    %c0_i32_0 = arith.constant 0 : i32
    return %arg0, %c0_i32 : i32, i32
  }
}

</mosaic_0001>

<bundles_post_ra>
// kernel: deterministic_policy_forward.1
= control target key start
LH: loop header
LB: loop body
LE: loop exit
PB: predicated region body
PF: predicated region fallthrough
CT: control target
= control target key end

     0   :  { %vm118_vm0 = vcmask 130048   ;;  %v1032_v41 = vmov 0   ;;  %vm483_vm1 = vcmask 261120   ;;  %vm850_vm2 = vcmask 64512   ;;  %s1675_s0 = inlined_call_operand.vmem [shape: f32[512,16], index: 0, kind: input, shape index: {}]   ;;  %s1676_s2 = inlined_call_operand.vmem [shape: f32[32,1], index: 2, kind: input, shape index: {}]   ;;  %s1677_s4 = inlined_call_operand.vmem [shape: f32[32,1], index: 4, kind: input, shape index: {}]   ;;  %s1678_s1 = inlined_call_operand.vmem [shape: f32[32,16], index: 1, kind: input, shape index: {}]   ;;  %s1679_s3 = inlined_call_operand.vmem [shape: f32[32,32], index: 3, kind: input, shape index: {}]   ;;  %s1680_s6 = inlined_call_operand.vmem [shape: f32[8,1], index: 6, kind: input, shape index: {}]   ;;  %s1681_s5 = inlined_call_operand.vmem [shape: f32[8,32], index: 5, kind: input, shape index: {}]   ;;  %s1682_s7 = inlined_call_operand.vmem [shape: f32[512,8], index: 7, kind: output, shape index: {}]  }
   0x1   :  { %v41_v0 = vld [vmem:[%s1675_s0 + $0x78] sm:$0xff]  ;;  %v40_v4 = vld [vmem:[%s1675_s0 + $0x70] sm:$0xff]  ;;  %v39_v8 = vld [vmem:[%s1675_s0 + $0x68] sm:$0xff]  ;;  %1022 = vset.pattern.permute.xlu1 %v1032_v41  ;;  %1021 = vset.pattern.permute.xlu0 %v1032_v41 }
   0x2   :  { %v57_v1 = vld [vmem:[%s1675_s0 + $0xf8] sm:$0xff]  ;;  %919 = vmatpush.xpose.msk.msra.mxu0 %vm118_vm0, %v41_v0  ;;  %v56_v5 = vld [vmem:[%s1675_s0 + $0xf0] sm:$0xff]  ;;  %v55_v9 = vld [vmem:[%s1675_s0 + $0xe8] sm:$0xff]  ;;  %1023 = vset.pattern.permute.xlu2 %v1032_v41 }
   0x3   :  { %v73_v2 = vld [vmem:[%s1675_s0 + $0x178] sm:$0xff]  ;;  %939 = vmatpush.xpose.msk.msra.mxu1 %vm118_vm0, %v57_v1  ;;  %v72_v6 = vld [vmem:[%s1675_s0 + $0x170] sm:$0xff]  ;;  %v71_v10 = vld [vmem:[%s1675_s0 + $0x168] sm:$0xff] }
   0x4   :  { %v89_v3 = vld [vmem:[%s1675_s0 + $0x1f8] sm:$0xff]  ;;  %959 = vmatpush.xpose.msk.msra.mxu2 %vm118_vm0, %v73_v2  ;;  %v88_v7 = vld [vmem:[%s1675_s0 + $0x1f0] sm:$0xff]  ;;  %v87_v11 = vld [vmem:[%s1675_s0 + $0x1e8] sm:$0xff] }
   0x5   :  { %979 = vmatpush.xpose.msk.msra.mxu3 %vm118_vm0, %v89_v3  ;;  %v38_v12 = vld [vmem:[%s1675_s0 + $0x60] sm:$0xff]  ;;  %v37_v16 = vld [vmem:[%s1675_s0 + $0x58] sm:$0xff]  ;;  %v36_v20 = vld [vmem:[%s1675_s0 + $0x50] sm:$0xff] }
   0x6   :  { %920 = vmatpush.xpose.msk.msra.mxu0 %vm118_vm0, %v40_v4  ;;  %v54_v13 = vld [vmem:[%s1675_s0 + $0xe0] sm:$0xff]  ;;  %v53_v17 = vld [vmem:[%s1675_s0 + $0xd8] sm:$0xff]  ;;  %v52_v21 = vld [vmem:[%s1675_s0 + $0xd0] sm:$0xff] }
   0x7   :  { %940 = vmatpush.xpose.msk.msra.mxu1 %vm118_vm0, %v56_v5  ;;  %v70_v14 = vld [vmem:[%s1675_s0 + $0x160] sm:$0xff]  ;;  %v69_v18 = vld [vmem:[%s1675_s0 + $0x158] sm:$0xff]  ;;  %v68_v22 = vld [vmem:[%s1675_s0 + $0x150] sm:$0xff] }
   0x8   :  { %960 = vmatpush.xpose.msk.msra.mxu2 %vm118_vm0, %v72_v6  ;;  %v86_v15 = vld [vmem:[%s1675_s0 + $0x1e0] sm:$0xff]  ;;  %v85_v19 = vld [vmem:[%s1675_s0 + $0x1d8] sm:$0xff]  ;;  %v84_v23 = vld [vmem:[%s1675_s0 + $0x1d0] sm:$0xff] }
   0x9   :  { %980 = vmatpush.xpose.msk.msra.mxu3 %vm118_vm0, %v88_v7  ;;  %v35_v24 = vld [vmem:[%s1675_s0 + $0x48] sm:$0xff]  ;;  %v34_v28 = vld [vmem:[%s1675_s0 + $0x40] sm:$0xff]  ;;  %v33_v32 = vld [vmem:[%s1675_s0 + $0x38] sm:$0xff] }
   0xa   :  { %921 = vmatpush.xpose.msk.msra.mxu0 %vm118_vm0, %v39_v8  ;;  %v51_v25 = vld [vmem:[%s1675_s0 + $0xc8] sm:$0xff]  ;;  %v50_v29 = vld [vmem:[%s1675_s0 + $0xc0] sm:$0xff]  ;;  %v49_v33 = vld [vmem:[%s1675_s0 + $0xb8] sm:$0xff] }
   0xb   :  { %941 = vmatpush.xpose.msk.msra.mxu1 %vm118_vm0, %v55_v9  ;;  %v67_v26 = vld [vmem:[%s1675_s0 + $0x148] sm:$0xff]  ;;  %v66_v30 = vld [vmem:[%s1675_s0 + $0x140] sm:$0xff]  ;;  %v65_v34 = vld [vmem:[%s1675_s0 + $0x138] sm:$0xff] }
   0xc   :  { %961 = vmatpush.xpose.msk.msra.mxu2 %vm118_vm0, %v71_v10  ;;  %v83_v27 = vld [vmem:[%s1675_s0 + $0x1c8] sm:$0xff]  ;;  %v82_v31 = vld [vmem:[%s1675_s0 + $0x1c0] sm:$0xff]  ;;  %v81_v35 = vld [vmem:[%s1675_s0 + $0x1b8] sm:$0xff] }
   0xd   :  { %981 = vmatpush.xpose.msk.msra.mxu3 %vm118_vm0, %v87_v11  ;;  %v95_v36 = vld [vmem:[%s1676_s2 + $0x8] sm:$0xff]  ;;  %v32_v37 = vld [vmem:[%s1675_s0 + $0x30] sm:$0xff]  ;;  %v94_v46 = vld [vmem:[%s1676_s2] sm:$0xff] }
   0xe   :  { %922 = vmatpush.xpose.msk.msra.mxu0 %vm118_vm0, %v38_v12  ;;  %v48_v38 = vld [vmem:[%s1675_s0 + $0xb0] sm:$0xff]  ;;  %105 = vperm.xlu1 %1022, %v95_v36   ;;  %v31_v42 = vld [vmem:[%s1675_s0 + $0x28] sm:$0xff]  ;;  %v97_v47 = vld [vmem:[%s1676_s2 + $0x18] sm:$0xff] }
   0xf   :  { %942 = vmatpush.xpose.msk.msra.mxu1 %vm118_vm0, %v54_v13  ;;  %v64_v39 = vld [vmem:[%s1675_s0 + $0x130] sm:$0xff]  ;;  %v47_v43 = vld [vmem:[%s1675_s0 + $0xa8] sm:$0xff]  ;;  %v30_v48 = vld [vmem:[%s1675_s0 + $0x20] sm:$0xff]  ;;  %115 = vperm.xlu0 %1021, %v97_v47  }
  0x10   :  { %962 = vmatpush.xpose.msk.msra.mxu2 %vm118_vm0, %v70_v14  ;;  %v80_v40 = vld [vmem:[%s1675_s0 + $0x1b0] sm:$0xff]  ;;  %v63_v44 = vld [vmem:[%s1675_s0 + $0x128] sm:$0xff]  ;;  %v46_v49 = vld [vmem:[%s1675_s0 + $0xa0] sm:$0xff] }
  0x11   :  { %982 = vmatpush.xpose.msk.msra.mxu3 %vm118_vm0, %v86_v15  ;;  %v79_v45 = vld [vmem:[%s1675_s0 + $0x1a8] sm:$0xff]  ;;  %v62_v50 = vld [vmem:[%s1675_s0 + $0x120] sm:$0xff]  ;;  %v29_v52 = vld [vmem:[%s1675_s0 + $0x18] sm:$0xff] }
  0x12   :  { %923 = vmatpush.xpose.msk.msra.mxu0 %vm118_vm0, %v37_v16  ;;  %v78_v51 = vld [vmem:[%s1675_s0 + $0x1a0] sm:$0xff]  ;;  %v45_v53 = vld [vmem:[%s1675_s0 + $0x98] sm:$0xff]  ;;  %v96_v56 = vld [vmem:[%s1676_s2 + $0x10] sm:$0xff] }
  0x13   :  { %943 = vmatpush.xpose.msk.msra.mxu1 %vm118_vm0, %v53_v17  ;;  %v61_v54 = vld [vmem:[%s1675_s0 + $0x118] sm:$0xff]  ;;  %v28_v57 = vld [vmem:[%s1675_s0 + $0x10] sm:$0xff]  ;;  %v27_v61 = vld [vmem:[%s1675_s0 + $0x8] sm:$0xff] }
  0x14   :  { %963 = vmatpush.xpose.msk.msra.mxu2 %vm118_vm0, %v69_v18  ;;  %v77_v55 = vld [vmem:[%s1675_s0 + $0x198] sm:$0xff]  ;;  %v44_v58 = vld [vmem:[%s1675_s0 + $0x90] sm:$0xff]  ;;  %v43_v62 = vld [vmem:[%s1675_s0 + $0x88] sm:$0xff] }
  0x15   :  { %983 = vmatpush.xpose.msk.msra.mxu3 %vm118_vm0, %v85_v19  ;;  %v60_v59 = vld [vmem:[%s1675_s0 + $0x110] sm:$0xff]  ;;  %v59_v63 = vld [vmem:[%s1675_s0 + $0x108] sm:$0xff]  ;;  %v459_v2 = vld [vmem:[%s1677_s4] sm:$0xff] }
  0x16   :  { %924 = vmatpush.xpose.msk.msra.mxu0 %vm118_vm0, %v36_v20  ;;  %100 = vperm.xlu1 %1022, %v94_v46   ;;  %v76_v60 = vld [vmem:[%s1675_s0 + $0x190] sm:$0xff]  ;;  %v75_v0 = vld [vmem:[%s1675_s0 + $0x188] sm:$0xff]  ;;  %v26_v3 = vld [vmem:[%s1675_s0] sm:$0xff] }
  0x17   :  { %944 = vmatpush.xpose.msk.msra.mxu1 %vm118_vm0, %v52_v21  ;;  %110 = vperm.xlu0 %1021, %v96_v56   ;;  %v460_v1 = vld [vmem:[%s1677_s4 + $0x8] sm:$0xff]  ;;  %v42_v4 = vld [vmem:[%s1675_s0 + $0x80] sm:$0xff]  ;;  %v92_v9 = vld [vmem:[%s1678_s1 + $0x10] sm:$0xff] }
  0x18   :  { %964 = vmatpush.xpose.msk.msra.mxu2 %vm118_vm0, %v68_v22  ;;  %v58_v5 = vld [vmem:[%s1675_s0 + $0x100] sm:$0xff]  ;;  %v91_v8 = vld [vmem:[%s1678_s1 + $0x8] sm:$0xff]  ;;  %v93_v10 = vld [vmem:[%s1678_s1 + $0x18] sm:$0xff] }
  0x19   :  { %984 = vmatpush.xpose.msk.msra.mxu3 %vm118_vm0, %v84_v23  ;;  %v74_v6 = vld [vmem:[%s1675_s0 + $0x180] sm:$0xff] }
  0x1a   :  { %925 = vmatpush.xpose.msk.msra.mxu0 %vm118_vm0, %v35_v24  ;;  %v90_v7 = vld [vmem:[%s1678_s1] sm:$0xff] }
  0x1b   :  { %945 = vmatpush.xpose.msk.msra.mxu1 %vm118_vm0, %v51_v25 }
  0x1c   :  { %965 = vmatpush.xpose.msk.msra.mxu2 %vm118_vm0, %v67_v26 }
  0x1d   :  { %985 = vmatpush.xpose.msk.msra.mxu3 %vm118_vm0, %v83_v27 }
  0x1e   :  { %926 = vmatpush.xpose.msk.msra.mxu0 %vm118_vm0, %v34_v28  ;;  %465 = vperm.xlu1 %1022, %v459_v2   ;;  %v461_v2 = vld [vmem:[%s1677_s4 + $0x10] sm:$0xff] }
  0x1f   :  { %946 = vmatpush.xpose.msk.msra.mxu1 %vm118_vm0, %v50_v29  ;;  %470 = vperm.xlu0 %1021, %v460_v1   ;;  %v456_v1 = vld [vmem:[%s1679_s3 + $0x8] sm:$0xff] }
  0x20   :  { %966 = vmatpush.xpose.msk.msra.mxu2 %vm118_vm0, %v66_v30 }
  0x21   :  { %986 = vmatpush.xpose.msk.msra.mxu3 %vm118_vm0, %v82_v31 }
  0x22   :  { %927 = vmatpush.xpose.msk.msra.mxu0 %vm118_vm0, %v33_v32 }
  0x23   :  { %947 = vmatpush.xpose.msk.msra.mxu1 %vm118_vm0, %v49_v33 }
  0x24   :  { %967 = vmatpush.xpose.msk.msra.mxu2 %vm118_vm0, %v65_v34 }
  0x25   :  { %987 = vmatpush.xpose.msk.msra.mxu3 %vm118_vm0, %v81_v35 }
  0x26   :  { %928 = vmatpush.xpose.msk.msra.mxu0 %vm118_vm0, %v32_v37 }
  0x27   :  { %948 = vmatpush.xpose.msk.msra.mxu1 %vm118_vm0, %v48_v38 }
  0x28   :  { %968 = vmatpush.xpose.msk.msra.mxu2 %vm118_vm0, %v64_v39 }
  0x29   :  { %988 = vmatpush.xpose.msk.msra.mxu3 %vm118_vm0, %v80_v40 }
  0x2a   :  { %929 = vmatpush.xpose.msk.msra.mxu0 %vm118_vm0, %v31_v42 }
  0x2b   :  { %949 = vmatpush.xpose.msk.msra.mxu1 %vm118_vm0, %v47_v43 }
  0x2c   :  { %969 = vmatpush.xpose.msk.msra.mxu2 %vm118_vm0, %v63_v44 }
  0x2d   :  { %989 = vmatpush.xpose.msk.msra.mxu3 %vm118_vm0, %v79_v45 }
  0x2e   :  { %930 = vmatpush.xpose.msk.msra.mxu0 %vm118_vm0, %v30_v48 }
  0x2f   :  { %950 = vmatpush.xpose.msk.msra.mxu1 %vm118_vm0, %v46_v49 }
  0x30   :  { %970 = vmatpush.xpose.msk.msra.mxu2 %vm118_vm0, %v62_v50 }
  0x31   :  { %990 = vmatpush.xpose.msk.msra.mxu3 %vm118_vm0, %v78_v51 }
  0x32   :  { %931 = vmatpush.xpose.msk.msra.mxu0 %vm118_vm0, %v29_v52 }
  0x33   :  { %951 = vmatpush.xpose.msk.msra.mxu1 %vm118_vm0, %v45_v53 }
  0x34   :  { %971 = vmatpush.xpose.msk.msra.mxu2 %vm118_vm0, %v61_v54 }
  0x35   :  { %991 = vmatpush.xpose.msk.msra.mxu3 %vm118_vm0, %v77_v55  ;;  %v455_v55 = vld [vmem:[%s1679_s3] sm:$0xff] }
  0x36   :  { %932 = vmatpush.xpose.msk.msra.mxu0 %vm118_vm0, %v28_v57 }
  0x37   :  { %952 = vmatpush.xpose.msk.msra.mxu1 %vm118_vm0, %v44_v58 }
  0x38   :  { %972 = vmatpush.xpose.msk.msra.mxu2 %vm118_vm0, %v60_v59 }
  0x39   :  { %992 = vmatpush.xpose.msk.msra.mxu3 %vm118_vm0, %v76_v60  ;;  %v462_v60 = vld [vmem:[%s1677_s4 + $0x18] sm:$0xff] }
  0x3a   :  { %933 = vmatpush.xpose.msk.msra.mxu0 %vm118_vm0, %v27_v61  ;;  %480 = vperm.xlu2 %1023, %v462_v60  }
  0x3b   :  { %953 = vmatpush.xpose.msk.msra.mxu1 %vm118_vm0, %v43_v62 }
  0x3c   :  { %973 = vmatpush.xpose.msk.msra.mxu2 %vm118_vm0, %v59_v63 }
  0x3d   :  { %993 = vmatpush.xpose.msk.msra.mxu3 %vm118_vm0, %v75_v0 }
  0x3e   :  { %934 = vmatpush.xpose.msk.msra.mxu0 %vm118_vm0, %v26_v3  ;;  %v457_v3 = vld [vmem:[%s1679_s3 + $0x10] sm:$0xff] }
  0x3f   :  { %954 = vmatpush.xpose.msk.msra.mxu1 %vm118_vm0, %v42_v4  ;;  %v629_v4 = vld [vmem:[%s1680_s6] sm:$0xff] }
  0x40   :  { %974 = vmatpush.xpose.msk.msra.mxu2 %vm118_vm0, %v58_v5  ;;  %v458_v5 = vld [vmem:[%s1679_s3 + $0x18] sm:$0xff] }
  0x41   :  { %994 = vmatpush.xpose.msk.msra.mxu3 %vm118_vm0, %v74_v6  ;;  %935 = vmatmul.msk.f32.vlgmr.msra.gmra.mxu0 %vm118_vm0, %v90_v7 }
  0x42   :  { %955 = vmatmul.msk.f32.vlgmr.msra.gmra.mxu1 %vm118_vm0, %v90_v7  ;;  %475 = vperm.xlu2 %1023, %v461_v2  }
  0x43   :  { %975 = vmatmul.msk.f32.vlgmr.msra.gmra.mxu2 %vm118_vm0, %v90_v7 }
  0x44   :  { %995 = vmatmul.msk.f32.vlgmr.msra.gmra.mxu3 %vm118_vm0, %v90_v7 }
  0x49   :  { %936 = vmatmul.msk.f32.gmra.mxu0 %vm118_vm0, %v91_v8 }
  0x4a   :  { %956 = vmatmul.msk.f32.gmra.mxu1 %vm118_vm0, %v91_v8  ;;  %632 = vperm.xlu2 %1023, %v629_v4  }
  0x4b   :  { %976 = vmatmul.msk.f32.gmra.mxu2 %vm118_vm0, %v91_v8 }
  0x4c   :  { %996 = vmatmul.msk.f32.gmra.mxu3 %vm118_vm0, %v91_v8 }
  0x51   :  { %937 = vmatmul.msk.f32.gmra.mxu0 %vm118_vm0, %v92_v9 }
  0x52   :  { %957 = vmatmul.msk.f32.gmra.mxu1 %vm118_vm0, %v92_v9 }
  0x53   :  { %977 = vmatmul.msk.f32.gmra.mxu2 %vm118_vm0, %v92_v9 }
  0x54   :  { %997 = vmatmul.msk.f32.gmra.mxu3 %vm118_vm0, %v92_v9 }
  0x59   :  { %938 = vmatmul.msk.f32.gmra.mxu0 %vm118_vm0, %v93_v10 }
  0x5a   :  { %958 = vmatmul.msk.f32.gmra.mxu1 %vm118_vm0, %v93_v10 }
  0x5b   :  { %978 = vmatmul.msk.f32.gmra.mxu2 %vm118_vm0, %v93_v10 }
  0x5c   :  { %998 = vmatmul.msk.f32.gmra.mxu3 %vm118_vm0, %v93_v10 }
  0x80   :  { %v106_v18 = vpop.permute.xlu1 %105 }
  0x81   :  { %v116_v17 = vpop.permute.xlu0 %115 }
  0x88   :  { %v101_v32 = vpop.permute.xlu1 %100 }
  0x89   :  { %v111_v23 = vpop.permute.xlu0 %110 }
  0xbe   :  { %v340_v11 = vpop.f32.mrf.mxu0 }
  0xbf   :  { %v369_v12 = vpop.f32.mrf.mxu1  ;;  %v341_v37 = vadd.f32 %v340_v11, %v101_v32 }
  0xc0   :  { %v370_v38 = vadd.f32 %v369_v12, %v101_v32  ;;  %v481_v12 = vpop.permute.xlu2 %480 }
  0xc1   :  { %v439_v49 = vmax.f32 %v341_v37, 0.0 }
  0xc2   :  { %v440_v50 = vmax.f32 %v370_v38, 0.0 }
  0xc6   :  { %v398_v13 = vpop.f32.mrf.mxu2  ;;  %v343_v15 = vpop.f32.mrf.mxu0 }
  0xc7   :  { %v427_v14 = vpop.f32.mrf.mxu3  ;;  %v372_v16 = vpop.f32.mrf.mxu1  ;;  %v344_v33 = vadd.f32 %v343_v15, %v106_v18  ;;  %v399_v56 = vadd.f32 %v398_v13, %v101_v32 }
  0xc8   :  { %v373_v34 = vadd.f32 %v372_v16, %v106_v18  ;;  %v428_v57 = vadd.f32 %v427_v14, %v101_v32 }
  0xc9   :  { %v443_v41 = vmax.f32 %v344_v33, 0.0  ;;  %v441_v63 = vmax.f32 %v399_v56, 0.0 }
  0xca   :  { %v444_v42 = vmax.f32 %v373_v34, 0.0  ;;  %v442_v0 = vmax.f32 %v428_v57, 0.0 }
  0xce   :  { %v401_v19 = vpop.f32.mrf.mxu2  ;;  %v346_v21 = vpop.f32.mrf.mxu0 }
  0xcf   :  { %v430_v20 = vpop.f32.mrf.mxu3  ;;  %v375_v22 = vpop.f32.mrf.mxu1  ;;  %v347_v28 = vadd.f32 %v346_v21, %v111_v23  ;;  %v402_v51 = vadd.f32 %v401_v19, %v106_v18 }
  0xd0   :  { %v376_v29 = vadd.f32 %v375_v22, %v111_v23  ;;  %v431_v52 = vadd.f32 %v430_v20, %v106_v18 }
  0xd1   :  { %v447_v39 = vmax.f32 %v347_v28, 0.0  ;;  %v445_v61 = vmax.f32 %v402_v51, 0.0 }
  0xd2   :  { %v448_v40 = vmax.f32 %v376_v29, 0.0  ;;  %v446_v62 = vmax.f32 %v431_v52, 0.0 }
  0xd6   :  { %v404_v24 = vpop.f32.mrf.mxu2  ;;  %v349_v26 = vpop.f32.mrf.mxu0 }
  0xd7   :  { %v433_v25 = vpop.f32.mrf.mxu3  ;;  %v378_v27 = vpop.f32.mrf.mxu1  ;;  %v350_v30 = vadd.f32 %v349_v26, %v116_v17  ;;  %v405_v45 = vadd.f32 %v404_v24, %v111_v23 }
  0xd8   :  { %v379_v31 = vadd.f32 %v378_v27, %v116_v17  ;;  %v434_v46 = vadd.f32 %v433_v25, %v111_v23  ;;  %v471_v24 = vpop.permute.xlu0 %470  ;;  %v466_v25 = vpop.permute.xlu1 %465 }
  0xd9   :  { %v451_v35 = vmax.f32 %v350_v30, 0.0  ;;  %v449_v58 = vmax.f32 %v405_v45, 0.0 }
  0xda   :  { %v452_v36 = vmax.f32 %v379_v31, 0.0  ;;  %v450_v59 = vmax.f32 %v434_v46, 0.0 }
  0xdb   :  { %508 = vmatpush.msrb.mxu0 %v451_v35 }
  0xdc   :  { %537 = vmatpush.msrb.mxu1 %v452_v36 }
  0xdd   :  { %509 = vmatpush.msrb.mxu0 %v447_v39 }
  0xde   :  { %v407_v43 = vpop.f32.mrf.mxu2  ;;  %538 = vmatpush.msrb.mxu1 %v448_v40  ;;  %v628_v40 = vld [vmem:[%s1681_s5] sm:$0xff] }
  0xdf   :  { %v436_v44 = vpop.f32.mrf.mxu3  ;;  %v408_v47 = vadd.f32 %v407_v43, %v116_v17  ;;  %510 = vmatpush.msrb.mxu0 %v443_v41 }
  0xe0   :  { %v437_v48 = vadd.f32 %v436_v44, %v116_v17  ;;  %539 = vmatpush.msrb.mxu1 %v444_v42  ;;  %v476_v17 = vpop.permute.xlu2 %475 }
  0xe1   :  { %v453_v53 = vmax.f32 %v408_v47, 0.0  ;;  %511 = vmatpush.msrb.mxu0 %v439_v49 }
  0xe2   :  { %v454_v54 = vmax.f32 %v437_v48, 0.0  ;;  %540 = vmatpush.msrb.mxu1 %v440_v50  ;;  %999 = vmatmul.msk.f32.vlgmr.msrb.gmra.mxu0 %vm483_vm1, %v455_v55 }
  0xe3   :  { %566 = vmatpush.msrb.mxu2 %v453_v53  ;;  %1003 = vmatmul.msk.f32.vlgmr.msrb.gmra.mxu1 %vm483_vm1, %v455_v55 }
  0xe4   :  { %595 = vmatpush.msrb.mxu3 %v454_v54 }
  0xe5   :  { %567 = vmatpush.msrb.mxu2 %v449_v58 }
  0xe6   :  { %596 = vmatpush.msrb.mxu3 %v450_v59 }
  0xe7   :  { %568 = vmatpush.msrb.mxu2 %v445_v61 }
  0xe8   :  { %597 = vmatpush.msrb.mxu3 %v446_v62  ;;  %v633_v59 = vpop.permute.xlu2 %632 }
  0xe9   :  { %569 = vmatpush.msrb.mxu2 %v441_v63 }
  0xea   :  { %598 = vmatpush.msrb.mxu3 %v442_v0  ;;  %1007 = vmatmul.msk.f32.vlgmr.msrb.gmra.mxu2 %vm483_vm1, %v455_v55 }
  0xeb   :  { %1011 = vmatmul.msk.f32.vlgmr.msrb.gmra.mxu3 %vm483_vm1, %v455_v55  ;;  %1000 = vmatmul.msk.f32.gmra.mxu0 %vm483_vm1, %v456_v1 }
  0xec   :  { %1004 = vmatmul.msk.f32.gmra.mxu1 %vm483_vm1, %v456_v1 }
  0xf2   :  { %1008 = vmatmul.msk.f32.gmra.mxu2 %vm483_vm1, %v456_v1 }
  0xf3   :  { %1012 = vmatmul.msk.f32.gmra.mxu3 %vm483_vm1, %v456_v1  ;;  %1001 = vmatmul.msk.f32.gmra.mxu0 %vm483_vm1, %v457_v3 }
  0xf4   :  { %1005 = vmatmul.msk.f32.gmra.mxu1 %vm483_vm1, %v457_v3 }
  0xfa   :  { %1009 = vmatmul.msk.f32.gmra.mxu2 %vm483_vm1, %v457_v3 }
  0xfb   :  { %1013 = vmatmul.msk.f32.gmra.mxu3 %vm483_vm1, %v457_v3  ;;  %1002 = vmatmul.msk.f32.gmra.mxu0 %vm483_vm1, %v458_v5 }
  0xfc   :  { %1006 = vmatmul.msk.f32.gmra.mxu1 %vm483_vm1, %v458_v5 }
 0x102   :  { %1010 = vmatmul.msk.f32.gmra.mxu2 %vm483_vm1, %v458_v5 }
 0x103   :  { %1014 = vmatmul.msk.f32.gmra.mxu3 %vm483_vm1, %v458_v5 }
 0x15f   :  { %v513_v6 = vpop.f32.mrf.mxu0 }
 0x160   :  { %v542_v7 = vpop.f32.mrf.mxu1  ;;  %v514_v32 = vadd.f32 %v513_v6, %v466_v25 }
 0x161   :  { %v543_v33 = vadd.f32 %v542_v7, %v466_v25 }
 0x162   :  { %v612_v38 = vmax.f32 %v514_v32, 0.0 }
 0x163   :  { %v613_v39 = vmax.f32 %v543_v33, 0.0 }
 0x168   :  { %v516_v8 = vpop.f32.mrf.mxu0 }
 0x169   :  { %v545_v9 = vpop.f32.mrf.mxu1  ;;  %v517_v26 = vadd.f32 %v516_v8, %v471_v24 }
 0x16a   :  { %v546_v27 = vadd.f32 %v545_v9, %v471_v24 }
 0x16b   :  { %v616_v36 = vmax.f32 %v517_v26, 0.0 }
 0x16c   :  { %v617_v37 = vmax.f32 %v546_v27, 0.0 }
 0x16d   :  { %v571_v10 = vpop.f32.mrf.mxu2 }
 0x16e   :  { %v600_v11 = vpop.f32.mrf.mxu3  ;;  %v572_v51 = vadd.f32 %v571_v10, %v466_v25 }
 0x16f   :  { %v601_v52 = vadd.f32 %v600_v11, %v466_v25 }
 0x170   :  { %v519_v13 = vpop.f32.mrf.mxu0  ;;  %v614_v57 = vmax.f32 %v572_v51, 0.0 }
 0x171   :  { %v548_v14 = vpop.f32.mrf.mxu1  ;;  %v520_v20 = vadd.f32 %v519_v13, %v476_v17  ;;  %v615_v58 = vmax.f32 %v601_v52, 0.0 }
 0x172   :  { %v549_v21 = vadd.f32 %v548_v14, %v476_v17 }
 0x173   :  { %v620_v34 = vmax.f32 %v520_v20, 0.0 }
 0x174   :  { %v621_v35 = vmax.f32 %v549_v21, 0.0 }
 0x175   :  { %v574_v15 = vpop.f32.mrf.mxu2 }
 0x176   :  { %v603_v16 = vpop.f32.mrf.mxu3  ;;  %v575_v47 = vadd.f32 %v574_v15, %v471_v24 }
 0x177   :  { %v604_v48 = vadd.f32 %v603_v16, %v471_v24 }
 0x178   :  { %v522_v18 = vpop.f32.mrf.mxu0  ;;  %v618_v55 = vmax.f32 %v575_v47, 0.0 }
 0x179   :  { %v551_v19 = vpop.f32.mrf.mxu1  ;;  %v523_v22 = vadd.f32 %v522_v18, %v481_v12  ;;  %v619_v56 = vmax.f32 %v604_v48, 0.0 }
 0x17a   :  { %v552_v23 = vadd.f32 %v551_v19, %v481_v12 }
 0x17b   :  { %v624_v28 = vmax.f32 %v523_v22, 0.0 }
 0x17c   :  { %v625_v29 = vmax.f32 %v552_v23, 0.0 }
 0x17d   :  { %v577_v30 = vpop.f32.mrf.mxu2  ;;  %650 = vmatpush.msra.mxu0 %v624_v28 }
 0x17e   :  { %v606_v31 = vpop.f32.mrf.mxu3  ;;  %670 = vmatpush.msra.mxu1 %v625_v29  ;;  %v578_v43 = vadd.f32 %v577_v30, %v476_v17 }
 0x17f   :  { %651 = vmatpush.msra.mxu0 %v620_v34  ;;  %v607_v44 = vadd.f32 %v606_v31, %v476_v17 }
 0x180   :  { %671 = vmatpush.msra.mxu1 %v621_v35  ;;  %v622_v53 = vmax.f32 %v578_v43, 0.0 }
 0x181   :  { %652 = vmatpush.msra.mxu0 %v616_v36  ;;  %v623_v54 = vmax.f32 %v607_v44, 0.0 }
 0x182   :  { %672 = vmatpush.msra.mxu1 %v617_v37 }
 0x183   :  { %653 = vmatpush.msra.mxu0 %v612_v38 }
 0x184   :  { %673 = vmatpush.msra.mxu1 %v613_v39  ;;  %1015 = vmatmul.msk.f32.vlgmr.msra.gmra.mxu0 %vm483_vm1, %v628_v40 }
 0x185   :  { %v580_v41 = vpop.f32.mrf.mxu2  ;;  %1016 = vmatmul.msk.f32.vlgmr.msra.gmra.mxu1 %vm483_vm1, %v628_v40 }
 0x186   :  { %v609_v42 = vpop.f32.mrf.mxu3  ;;  %v581_v45 = vadd.f32 %v580_v41, %v481_v12 }
 0x187   :  { %v610_v46 = vadd.f32 %v609_v42, %v481_v12 }
 0x188   :  { %v626_v49 = vmax.f32 %v581_v45, 0.0 }
 0x189   :  { %v627_v50 = vmax.f32 %v610_v46, 0.0 }
 0x18a   :  { %690 = vmatpush.msra.mxu2 %v626_v49 }
 0x18b   :  { %710 = vmatpush.msra.mxu3 %v627_v50 }
 0x18c   :  { %691 = vmatpush.msra.mxu2 %v622_v53 }
 0x18d   :  { %711 = vmatpush.msra.mxu3 %v623_v54 }
 0x18e   :  { %692 = vmatpush.msra.mxu2 %v618_v55 }
 0x18f   :  { %712 = vmatpush.msra.mxu3 %v619_v56 }
 0x190   :  { %693 = vmatpush.msra.mxu2 %v614_v57 }
 0x191   :  { %713 = vmatpush.msra.mxu3 %v615_v58  ;;  %1017 = vmatmul.msk.f32.vlgmr.msra.gmra.mxu2 %vm483_vm1, %v628_v40 }
 0x192   :  { %1018 = vmatmul.msk.f32.vlgmr.msra.gmra.mxu3 %vm483_vm1, %v628_v40 }
 0x201   :  { %v655_v60 = vpop.f32.mrf.mxu0 }
 0x202   :  { %v675_v61 = vpop.f32.mrf.mxu1  ;;  %v656_v62 = vadd.f32 %v655_v60, %v633_v59 }
 0x203   :  { %v676_v63 = vadd.f32 %v675_v61, %v633_v59 }
 0x204   :  { %1024 = vtanh.f32 %v656_v62 }
 0x205   :  { %1026 = vtanh.f32 %v676_v63 }
 0x20a   :  { %v1025_v0 = vpop.eup %1024 }
 0x20b   :  { %v1027_v1 = vpop.eup %1026  ;;  %722 = vxpose.xlu0.b32.start.end [1/1] (short) %v1025_v0, 128 }
 0x20c   :  { %754 = vxpose.xlu1.b32.start.end [1/1] (short) %v1027_v1, 128 }
 0x214   :  { %v695_v2 = vpop.f32.mrf.mxu2 }
 0x215   :  { %v696_v3 = vadd.f32 %v695_v2, %v633_v59  ;;  %v715_v5 = vpop.f32.mrf.mxu3 }
 0x216   :  { %v716_v6 = vadd.f32 %v715_v5, %v633_v59 }
 0x217   :  { %1028 = vtanh.f32 %v696_v3 }
 0x218   :  { %1030 = vtanh.f32 %v716_v6 }
 0x21d   :  { %v1029_v4 = vpop.eup %1028 }
 0x21e   :  { %786 = vxpose.xlu2.b32.start.end [1/1] (short) %v1029_v4, 128  ;;  %v1031_v7 = vpop.eup %1030 }
 0x28b   :  { %818 = vxpose.xlu0.b32.start.end [1/1] (short) %v1031_v7, 128 }
 0x2af   :  { %v738_v8 = vpop.trf.xlu0 }
 0x2b0   :  { %851 = vst.msk [vmem:[%s1682_s7] sm:$0xff] %vm850_vm2, %v738_v8  ;;  %v770_v21 = vpop.trf.xlu1 }
 0x2b1   :  { %867 = vst.msk [vmem:[%s1682_s7 + $0x80] sm:$0xff] %vm850_vm2, %v770_v21 }
 0x2b7   :  { %v739_v9 = vpop.trf.xlu0  ;;  %v802_v20 = vpop.trf.xlu2 }
 0x2b8   :  { %852 = vst.msk [vmem:[%s1682_s7 + $0x8] sm:$0xff] %vm850_vm2, %v739_v9  ;;  %v771_v24 = vpop.trf.xlu1 }
 0x2b9   :  { %883 = vst.msk [vmem:[%s1682_s7 + $0x100] sm:$0xff] %vm850_vm2, %v802_v20 }
 0x2ba   :  { %868 = vst.msk [vmem:[%s1682_s7 + $0x88] sm:$0xff] %vm850_vm2, %v771_v24 }
 0x2bf   :  { %v740_v10 = vpop.trf.xlu0  ;;  %v803_v23 = vpop.trf.xlu2 }
 0x2c0   :  { %853 = vst.msk [vmem:[%s1682_s7 + $0x10] sm:$0xff] %vm850_vm2, %v740_v10  ;;  %v772_v27 = vpop.trf.xlu1 }
 0x2c1   :  { %884 = vst.msk [vmem:[%s1682_s7 + $0x108] sm:$0xff] %vm850_vm2, %v803_v23 }
 0x2c2   :  { %869 = vst.msk [vmem:[%s1682_s7 + $0x90] sm:$0xff] %vm850_vm2, %v772_v27 }
 0x2c7   :  { %v741_v11 = vpop.trf.xlu0  ;;  %v804_v26 = vpop.trf.xlu2 }
 0x2c8   :  { %854 = vst.msk [vmem:[%s1682_s7 + $0x18] sm:$0xff] %vm850_vm2, %v741_v11  ;;  %v773_v30 = vpop.trf.xlu1 }
 0x2c9   :  { %885 = vst.msk [vmem:[%s1682_s7 + $0x110] sm:$0xff] %vm850_vm2, %v804_v26 }
 0x2ca   :  { %870 = vst.msk [vmem:[%s1682_s7 + $0x98] sm:$0xff] %vm850_vm2, %v773_v30 }
 0x2cf   :  { %v742_v12 = vpop.trf.xlu0  ;;  %v805_v29 = vpop.trf.xlu2 }
 0x2d0   :  { %855 = vst.msk [vmem:[%s1682_s7 + $0x20] sm:$0xff] %vm850_vm2, %v742_v12  ;;  %v774_v33 = vpop.trf.xlu1 }
 0x2d1   :  { %886 = vst.msk [vmem:[%s1682_s7 + $0x118] sm:$0xff] %vm850_vm2, %v805_v29 }
 0x2d2   :  { %871 = vst.msk [vmem:[%s1682_s7 + $0xa0] sm:$0xff] %vm850_vm2, %v774_v33 }
 0x2d7   :  { %v743_v13 = vpop.trf.xlu0  ;;  %v806_v32 = vpop.trf.xlu2 }
 0x2d8   :  { %856 = vst.msk [vmem:[%s1682_s7 + $0x28] sm:$0xff] %vm850_vm2, %v743_v13  ;;  %v775_v36 = vpop.trf.xlu1 }
 0x2d9   :  { %887 = vst.msk [vmem:[%s1682_s7 + $0x120] sm:$0xff] %vm850_vm2, %v806_v32 }
 0x2da   :  { %872 = vst.msk [vmem:[%s1682_s7 + $0xa8] sm:$0xff] %vm850_vm2, %v775_v36 }
 0x2df   :  { %v744_v14 = vpop.trf.xlu0  ;;  %v807_v35 = vpop.trf.xlu2 }
 0x2e0   :  { %857 = vst.msk [vmem:[%s1682_s7 + $0x30] sm:$0xff] %vm850_vm2, %v744_v14  ;;  %v776_v39 = vpop.trf.xlu1 }
 0x2e1   :  { %888 = vst.msk [vmem:[%s1682_s7 + $0x128] sm:$0xff] %vm850_vm2, %v807_v35 }
 0x2e2   :  { %873 = vst.msk [vmem:[%s1682_s7 + $0xb0] sm:$0xff] %vm850_vm2, %v776_v39 }
 0x2e7   :  { %v745_v15 = vpop.trf.xlu0  ;;  %v808_v38 = vpop.trf.xlu2 }
 0x2e8   :  { %858 = vst.msk [vmem:[%s1682_s7 + $0x38] sm:$0xff] %vm850_vm2, %v745_v15  ;;  %v777_v42 = vpop.trf.xlu1 }
 0x2e9   :  { %889 = vst.msk [vmem:[%s1682_s7 + $0x130] sm:$0xff] %vm850_vm2, %v808_v38 }
 0x2ea   :  { %874 = vst.msk [vmem:[%s1682_s7 + $0xb8] sm:$0xff] %vm850_vm2, %v777_v42 }
 0x2ef   :  { %v746_v16 = vpop.trf.xlu0  ;;  %v809_v41 = vpop.trf.xlu2 }
 0x2f0   :  { %859 = vst.msk [vmem:[%s1682_s7 + $0x40] sm:$0xff] %vm850_vm2, %v746_v16  ;;  %v778_v45 = vpop.trf.xlu1 }
 0x2f1   :  { %890 = vst.msk [vmem:[%s1682_s7 + $0x138] sm:$0xff] %vm850_vm2, %v809_v41 }
 0x2f2   :  { %875 = vst.msk [vmem:[%s1682_s7 + $0xc0] sm:$0xff] %vm850_vm2, %v778_v45 }
 0x2f7   :  { %v747_v17 = vpop.trf.xlu0  ;;  %v810_v44 = vpop.trf.xlu2 }
 0x2f8   :  { %860 = vst.msk [vmem:[%s1682_s7 + $0x48] sm:$0xff] %vm850_vm2, %v747_v17  ;;  %v779_v48 = vpop.trf.xlu1 }
 0x2f9   :  { %891 = vst.msk [vmem:[%s1682_s7 + $0x140] sm:$0xff] %vm850_vm2, %v810_v44 }
 0x2fa   :  { %876 = vst.msk [vmem:[%s1682_s7 + $0xc8] sm:$0xff] %vm850_vm2, %v779_v48 }
 0x2ff   :  { %v748_v18 = vpop.trf.xlu0  ;;  %v811_v47 = vpop.trf.xlu2 }
 0x300   :  { %861 = vst.msk [vmem:[%s1682_s7 + $0x50] sm:$0xff] %vm850_vm2, %v748_v18  ;;  %v780_v51 = vpop.trf.xlu1 }
 0x301   :  { %892 = vst.msk [vmem:[%s1682_s7 + $0x148] sm:$0xff] %vm850_vm2, %v811_v47 }
 0x302   :  { %877 = vst.msk [vmem:[%s1682_s7 + $0xd0] sm:$0xff] %vm850_vm2, %v780_v51 }
 0x307   :  { %v749_v19 = vpop.trf.xlu0  ;;  %v812_v50 = vpop.trf.xlu2 }
 0x308   :  { %862 = vst.msk [vmem:[%s1682_s7 + $0x58] sm:$0xff] %vm850_vm2, %v749_v19  ;;  %v781_v54 = vpop.trf.xlu1 }
 0x309   :  { %893 = vst.msk [vmem:[%s1682_s7 + $0x150] sm:$0xff] %vm850_vm2, %v812_v50 }
 0x30a   :  { %878 = vst.msk [vmem:[%s1682_s7 + $0xd8] sm:$0xff] %vm850_vm2, %v781_v54 }
 0x30f   :  { %v750_v22 = vpop.trf.xlu0  ;;  %v813_v53 = vpop.trf.xlu2 }
 0x310   :  { %863 = vst.msk [vmem:[%s1682_s7 + $0x60] sm:$0xff] %vm850_vm2, %v750_v22  ;;  %v782_v57 = vpop.trf.xlu1 }
 0x311   :  { %894 = vst.msk [vmem:[%s1682_s7 + $0x158] sm:$0xff] %vm850_vm2, %v813_v53 }
 0x312   :  { %879 = vst.msk [vmem:[%s1682_s7 + $0xe0] sm:$0xff] %vm850_vm2, %v782_v57 }
 0x317   :  { %v751_v25 = vpop.trf.xlu0  ;;  %v814_v56 = vpop.trf.xlu2 }
 0x318   :  { %864 = vst.msk [vmem:[%s1682_s7 + $0x68] sm:$0xff] %vm850_vm2, %v751_v25  ;;  %v783_v60 = vpop.trf.xlu1 }
 0x319   :  { %895 = vst.msk [vmem:[%s1682_s7 + $0x160] sm:$0xff] %vm850_vm2, %v814_v56 }
 0x31a   :  { %880 = vst.msk [vmem:[%s1682_s7 + $0xe8] sm:$0xff] %vm850_vm2, %v783_v60 }
 0x31f   :  { %v752_v28 = vpop.trf.xlu0  ;;  %v815_v59 = vpop.trf.xlu2 }
 0x320   :  { %865 = vst.msk [vmem:[%s1682_s7 + $0x70] sm:$0xff] %vm850_vm2, %v752_v28  ;;  %v784_v63 = vpop.trf.xlu1 }
 0x321   :  { %896 = vst.msk [vmem:[%s1682_s7 + $0x168] sm:$0xff] %vm850_vm2, %v815_v59 }
 0x322   :  { %881 = vst.msk [vmem:[%s1682_s7 + $0xf0] sm:$0xff] %vm850_vm2, %v784_v63 }
 0x327   :  { %v753_v31 = vpop.trf.xlu0  ;;  %v816_v62 = vpop.trf.xlu2 }
 0x328   :  { %866 = vst.msk [vmem:[%s1682_s7 + $0x78] sm:$0xff] %vm850_vm2, %v753_v31  ;;  %v785_v2 = vpop.trf.xlu1 }
 0x329   :  { %897 = vst.msk [vmem:[%s1682_s7 + $0x170] sm:$0xff] %vm850_vm2, %v816_v62 }
 0x32a   :  { %882 = vst.msk [vmem:[%s1682_s7 + $0xf8] sm:$0xff] %vm850_vm2, %v785_v2 }
 0x32f   :  { %v834_v34 = vpop.trf.xlu0  ;;  %v817_v1 = vpop.trf.xlu2 }
 0x330   :  { %899 = vst.msk [vmem:[%s1682_s7 + $0x180] sm:$0xff] %vm850_vm2, %v834_v34 }
 0x331   :  { %898 = vst.msk [vmem:[%s1682_s7 + $0x178] sm:$0xff] %vm850_vm2, %v817_v1 }
 0x337   :  { %v835_v37 = vpop.trf.xlu0 }
 0x338   :  { %900 = vst.msk [vmem:[%s1682_s7 + $0x188] sm:$0xff] %vm850_vm2, %v835_v37 }
 0x33f   :  { %v836_v40 = vpop.trf.xlu0 }
 0x340   :  { %901 = vst.msk [vmem:[%s1682_s7 + $0x190] sm:$0xff] %vm850_vm2, %v836_v40 }
 0x347   :  { %v837_v43 = vpop.trf.xlu0 }
 0x348   :  { %902 = vst.msk [vmem:[%s1682_s7 + $0x198] sm:$0xff] %vm850_vm2, %v837_v43 }
 0x34f   :  { %v838_v46 = vpop.trf.xlu0 }
 0x350   :  { %903 = vst.msk [vmem:[%s1682_s7 + $0x1a0] sm:$0xff] %vm850_vm2, %v838_v46 }
 0x357   :  { %v839_v49 = vpop.trf.xlu0 }
 0x358   :  { %904 = vst.msk [vmem:[%s1682_s7 + $0x1a8] sm:$0xff] %vm850_vm2, %v839_v49 }
 0x35f   :  { %v840_v52 = vpop.trf.xlu0 }
 0x360   :  { %905 = vst.msk [vmem:[%s1682_s7 + $0x1b0] sm:$0xff] %vm850_vm2, %v840_v52 }
 0x367   :  { %v841_v55 = vpop.trf.xlu0 }
 0x368   :  { %906 = vst.msk [vmem:[%s1682_s7 + $0x1b8] sm:$0xff] %vm850_vm2, %v841_v55 }
 0x36f   :  { %v842_v58 = vpop.trf.xlu0 }
 0x370   :  { %907 = vst.msk [vmem:[%s1682_s7 + $0x1c0] sm:$0xff] %vm850_vm2, %v842_v58 }
 0x377   :  { %v843_v61 = vpop.trf.xlu0 }
 0x378   :  { %908 = vst.msk [vmem:[%s1682_s7 + $0x1c8] sm:$0xff] %vm850_vm2, %v843_v61 }
 0x37f   :  { %v844_v0 = vpop.trf.xlu0 }
 0x380   :  { %909 = vst.msk [vmem:[%s1682_s7 + $0x1d0] sm:$0xff] %vm850_vm2, %v844_v0 }
 0x387   :  { %v845_v3 = vpop.trf.xlu0 }
 0x388   :  { %910 = vst.msk [vmem:[%s1682_s7 + $0x1d8] sm:$0xff] %vm850_vm2, %v845_v3 }
 0x38f   :  { %v846_v4 = vpop.trf.xlu0 }
 0x390   :  { %911 = vst.msk [vmem:[%s1682_s7 + $0x1e0] sm:$0xff] %vm850_vm2, %v846_v4 }
 0x397   :  { %v847_v5 = vpop.trf.xlu0 }
 0x398   :  { %912 = vst.msk [vmem:[%s1682_s7 + $0x1e8] sm:$0xff] %vm850_vm2, %v847_v5 }
 0x39f   :  { %v848_v6 = vpop.trf.xlu0 }
 0x3a0   :  { %913 = vst.msk [vmem:[%s1682_s7 + $0x1f0] sm:$0xff] %vm850_vm2, %v848_v6 }
 0x3a7   :  { %v849_v7 = vpop.trf.xlu0 }
 0x3a8   :  { %914 = vst.msk [vmem:[%s1682_s7 + $0x1f8] sm:$0xff] %vm850_vm2, %v849_v7 }

</bundles_post_ra>
